<compile_context>
chip_gen: v7x
topology: tpu7x:2x2x1
jax: 0.10.0
libtpu: 0.0.40
codegen_flags: <defaults>
</compile_context>

<pallas_src>
import functools

import jax
import jax.numpy as jnp
from jax.experimental import pallas as pl
from jax.experimental.pallas import tpu as pltpu


_VMEM_LIMIT_BYTES = 48 * 1024 * 1024


# --------------------------------------------------------------------------
# Tile helpers
# --------------------------------------------------------------------------

def _round_up(x, m):
    return ((x + m - 1) // m) * m


def _pick_tile(dim, preferred, align):
    """Largest multiple of `align` <= preferred that divides `dim`, else full dim."""
    if dim <= preferred:
        return dim
    t = (preferred // align) * align
    while t >= align:
        if dim % t == 0:
            return t
        t -= align
    return dim


def _compiler_params(semantics):
    return pltpu.CompilerParams(dimension_semantics=semantics,
                                vmem_limit_bytes=_VMEM_LIMIT_BYTES)


# --------------------------------------------------------------------------
# Kernels
# --------------------------------------------------------------------------

def _ln_qkv_kernel(x_ref, lnw_ref, lnb_ref, w_ref, b_ref,
                   q_ref, k_ref, v_ref, ln_ref, *, head_dim):
    """Per (batch, head): LN(x) (cached across heads) @ W_qkv_head -> q,k,v slabs."""
    h = pl.program_id(1)

    @pl.when(h == 0)
    def _():
        x = x_ref[0].astype(jnp.float32)
        mean = jnp.mean(x, axis=-1, keepdims=True)
        var = jnp.mean(jnp.square(x - mean), axis=-1, keepdims=True)
        xn = (x - mean) * jax.lax.rsqrt(var + 1e-5)
        xn = xn * lnw_ref[...].astype(jnp.float32) + lnb_ref[...].astype(jnp.float32)
        ln_ref[...] = xn.astype(ln_ref.dtype)          # cache in compute dtype

    y = jnp.dot(ln_ref[...], w_ref[0], preferred_element_type=jnp.float32)
    y = y + b_ref[0].astype(jnp.float32)
    y = y.astype(q_ref.dtype)
    q_ref[0, 0] = y[:, :head_dim]
    k_ref[0, 0] = y[:, head_dim:2 * head_dim]
    v_ref[0, 0] = y[:, 2 * head_dim:]


def _attn_out_kernel(q_ref, k_ref, v_ref, wo_ref, bo_ref, r_ref, o_ref,
                     acc_ref, *, scale, approx_recip):
    """Per (batch, head): softmax((q*scale) k^T) v, accumulate out_proj + residual."""
    h = pl.program_id(1)

    @pl.when(h == 0)
    def _():
        acc_ref[...] = (r_ref[0].astype(jnp.float32)
                        + bo_ref[...].astype(jnp.float32))

    q = q_ref[0, 0] * scale                                     # fold scale into q
    # contract last dims directly (no k.T transpose materialization)
    s = jax.lax.dot_general(q, k_ref[0, 0], (((1,), (1,)), ((), ())),
                            preferred_element_type=jnp.float32)
    s = s - jnp.max(s, axis=-1, keepdims=True)
    p = jnp.exp(s)
    denom = jnp.sum(p, axis=-1, keepdims=True)
    p = p * pl.reciprocal(denom, approx=approx_recip)
    o_h = jnp.dot(p.astype(v_ref.dtype), v_ref[0, 0],
                  preferred_element_type=jnp.float32)           # (L, hd)
    acc_ref[...] += jnp.dot(o_h.astype(wo_ref.dtype), wo_ref[0],
                            preferred_element_type=jnp.float32)  # (L, D)

    @pl.when(h == pl.num_programs(1) - 1)
    def _():
        o_ref[0] = acc_ref[...].astype(o_ref.dtype)


def _mlp_kernel(x_ref, lnw_ref, lnb_ref, wfc_ref, bfc_ref, wpj_ref, bpj_ref,
                o_ref, acc_ref, ln_ref):
    """y = x + c_proj(QuickGELU(c_fc(LayerNorm(x)))), hidden dim on grid axis 1."""
    kk = pl.program_id(1)

    @pl.when(kk == 0)
    def _():
        x = x_ref[...].astype(jnp.float32)
        mean = jnp.mean(x, axis=-1, keepdims=True)
        var = jnp.mean(jnp.square(x - mean), axis=-1, keepdims=True)
        xn = (x - mean) * jax.lax.rsqrt(var + 1e-5)
        xn = xn * lnw_ref[...].astype(jnp.float32) + lnb_ref[...].astype(jnp.float32)
        ln_ref[...] = xn.astype(ln_ref.dtype)          # cache in compute dtype
        acc_ref[...] = jnp.zeros_like(acc_ref)

    hid = jnp.dot(ln_ref[...], wfc_ref[...], preferred_element_type=jnp.float32)
    hid = hid + bfc_ref[...].astype(jnp.float32)
    hid = hid * jax.nn.sigmoid(1.702 * hid)                     # QuickGELU (fp32)
    acc_ref[...] += jnp.dot(hid.astype(wpj_ref.dtype), wpj_ref[...],
                            preferred_element_type=jnp.float32)

    @pl.when(kk == pl.num_programs(1) - 1)
    def _():
        y = (acc_ref[...] + bpj_ref[...].astype(jnp.float32)
             + x_ref[...].astype(jnp.float32))
        o_ref[...] = y.astype(o_ref.dtype)


# --------------------------------------------------------------------------
# pallas_call wrappers
# --------------------------------------------------------------------------

def pallas_ln_qkv(xb, ln_w, ln_b, wqkv, bqkv):
    """xb:(N,L,D), wqkv:(H,D,3*hd), bqkv:(H,1,3*hd) -> q,k,v each (N,H,L,hd)."""
    N, L, D = xb.shape
    H, _, three_hd = wqkv.shape
    hd = three_hd // 3
    kernel = functools.partial(_ln_qkv_kernel, head_dim=hd)
    out_shape = tuple(jax.ShapeDtypeStruct((N, H, L, hd), xb.dtype) for _ in range(3))
    out_specs = tuple(pl.BlockSpec((1, 1, L, hd), lambda n, h: (n, h, 0, 0))
                      for _ in range(3))
    return pl.pallas_call(
        kernel,
        out_shape=out_shape,
        grid=(N, H),
        in_specs=[
            pl.BlockSpec((1, L, D), lambda n, h: (n, 0, 0)),
            pl.BlockSpec((1, D), lambda n, h: (0, 0)),
            pl.BlockSpec((1, D), lambda n, h: (0, 0)),
            pl.BlockSpec((1, D, three_hd), lambda n, h: (h, 0, 0)),
            pl.BlockSpec((1, 1, three_hd), lambda n, h: (h, 0, 0)),
        ],
        out_specs=out_specs,
        scratch_shapes=[pltpu.VMEM((L, D), xb.dtype)],       # LayerNorm(x) cache
        compiler_params=_compiler_params(("parallel", "arbitrary")),
    )(xb, ln_w.reshape(1, D), ln_b.reshape(1, D), wqkv, bqkv)


def pallas_attn_out(q, k, v, wout, bout, resid, *, approx_recip=True):
    """Fused multi-head attention + out_proj + residual.  Returns (N, L, D)."""
    N, H, L, hd = q.shape
    D = wout.shape[-1]
    scale = 1.0 / float(hd) ** 0.5
    kernel = functools.partial(_attn_out_kernel, scale=scale,
                               approx_recip=approx_recip)
    return pl.pallas_call(
        kernel,
        out_shape=jax.ShapeDtypeStruct((N, L, D), resid.dtype),
        grid=(N, H),
        in_specs=[
            pl.BlockSpec((1, 1, L, hd), lambda n, h: (n, h, 0, 0)),
            pl.BlockSpec((1, 1, L, hd), lambda n, h: (n, h, 0, 0)),
            pl.BlockSpec((1, 1, L, hd), lambda n, h: (n, h, 0, 0)),
            pl.BlockSpec((1, hd, D), lambda n, h: (h, 0, 0)),
            pl.BlockSpec((1, D), lambda n, h: (0, 0)),
            pl.BlockSpec((1, L, D), lambda n, h: (n, 0, 0)),
        ],
        out_specs=pl.BlockSpec((1, L, D), lambda n, h: (n, 0, 0)),
        scratch_shapes=[pltpu.VMEM((L, D), jnp.float32)],    # out_proj accumulator
        compiler_params=_compiler_params(("parallel", "arbitrary")),
    )(q, k, v, wout, bout.reshape(1, D), resid)


def pallas_mlp(x2d, ln_w, ln_b, w_fc, b_fc, w_pj, b_pj):
    M, D = x2d.shape
    Dh = w_fc.shape[1]
    align = 16 if jnp.dtype(x2d.dtype).itemsize < 4 else 8   # bf16 sublane pack
    if M <= 512:
        tm = _round_up(M, align)
    else:
        tm = 512
    Mp = _round_up(M, tm)
    xp = x2d if Mp == M else jnp.pad(x2d, ((0, Mp - M), (0, 0)))
    tk = _pick_tile(Dh, 512, 128)
    out = pl.pallas_call(
        _mlp_kernel,
        out_shape=jax.ShapeDtypeStruct((Mp, D), x2d.dtype),
        grid=(Mp // tm, Dh // tk),
        in_specs=[
            pl.BlockSpec((tm, D), lambda i, kk: (i, 0)),
            pl.BlockSpec((1, D), lambda i, kk: (0, 0)),
            pl.BlockSpec((1, D), lambda i, kk: (0, 0)),
            pl.BlockSpec((D, tk), lambda i, kk: (0, kk)),
            pl.BlockSpec((1, tk), lambda i, kk: (0, kk)),
            pl.BlockSpec((tk, D), lambda i, kk: (kk, 0)),
            pl.BlockSpec((1, D), lambda i, kk: (0, 0)),
        ],
        out_specs=pl.BlockSpec((tm, D), lambda i, kk: (i, 0)),
        scratch_shapes=[
            pltpu.VMEM((tm, D), jnp.float32),   # c_proj accumulator (fp32)
            pltpu.VMEM((tm, D), x2d.dtype),     # LayerNorm(x) cache (compute dtype)
        ],
        compiler_params=_compiler_params(("parallel", "arbitrary")),
    )(xp, ln_w.reshape(1, D), ln_b.reshape(1, D),
      w_fc, b_fc.reshape(1, Dh), w_pj, b_pj.reshape(1, D))
    return out[:M] if Mp != M else out


# --------------------------------------------------------------------------
# Model glue (plain JAX is layout metadata only; all compute is in kernels)
# --------------------------------------------------------------------------

def residual_attention_block(xb, p, *, approx_recip=True):
    # xb: (N, L, D) batch-first.
    N, L, D = xb.shape
    # x = x + out_proj(attn(ln_1(x)))      [LN + out_proj + residual fused]
    q, k, v = pallas_ln_qkv(xb, p["ln1_w"], p["ln1_b"], p["wqkv"], p["bqkv"])
    xb = pallas_attn_out(q, k, v, p["wout"], p["bout"], xb,
                         approx_recip=approx_recip)
    # x = x + c_proj(QuickGELU(c_fc(ln_2(x))))   [single fused MLP kernel]
    x2 = pallas_mlp(xb.reshape(N * L, D), p["ln2_w"], p["ln2_b"],
                    p["c_fc_w"], p["c_fc_b"], p["c_proj_w"], p["c_proj_b"])
    return x2.reshape(N, L, D)


def transformer_forward(x, params, out_layers=(6, 12, 18, 24), approx_recip=True):
    # clip_vit_standard_forward path. x: (L, N, D) like torch; attn_mask=None.
    xb = jnp.transpose(x, (1, 0, 2))            # -> (N, L, D), once per forward
    out_tokens = []
    idx = 0
    for p in params:
        idx += 1
        xb = residual_attention_block(xb, p, approx_recip=approx_recip)
        if idx in out_layers:
            out_tokens.append(jnp.transpose(xb, (1, 0, 2)))
    xf = jnp.transpose(xb, (1, 0, 2))           # back to (L, N, D)
    return [xf, xf], out_tokens


# --------------------------------------------------------------------------
# Deterministic parameter init (head-major qkv / out_proj layout).
# To load torch weights:  wqkv = in_proj_weight.T.reshape(D,3,H,hd)
#                                  .transpose(2,0,1,3).reshape(H,D,3*hd)  etc.
# --------------------------------------------------------------------------

def init_params(key, width, layers, heads, dtype=jnp.bfloat16):
    assert width % heads == 0, "d_model must be divisible by n_head"
    D, H = width, heads
    hd = D // H
    params = []
    for i in range(layers):
        keys = jax.random.split(jax.random.fold_in(key, i), 4)
        p = {
            "ln1_w": jnp.ones((D,), dtype),
            "ln1_b": jnp.zeros((D,), dtype),
            "wqkv": (0.02 * jax.random.normal(keys[0], (H, D, 3 * hd))).astype(dtype),
            "bqkv": jnp.zeros((H, 1, 3 * hd), dtype),
            "wout": (0.02 * jax.random.normal(keys[1], (H, hd, D))).astype(dtype),
            "bout": jnp.zeros((D,), dtype),
            "ln2_w": jnp.ones((D,), dtype),
            "ln2_b": jnp.zeros((D,), dtype),
            "c_fc_w": (0.02 * jax.random.normal(keys[2], (D, 4 * D))).astype(dtype),
            "c_fc_b": jnp.zeros((4 * D,), dtype),
            "c_proj_w": (0.02 * jax.random.normal(keys[3], (4 * D, D))).astype(dtype),
            "c_proj_b": jnp.zeros((D,), dtype),
        }
        params.append(p)
    return params


# --------------------------------------------------------------------------
# Main
# --------------------------------------------------------------------------

if __name__ == "__main__":
    # Small shapes: width=32, heads=4, layers=2, seq=8, batch=2
    WIDTH, HEADS, LAYERS = 32, 4, 2
    SEQ, BATCH = 8, 2
    OUT_LAYERS = (1, 2)
    DTYPE = jnp.bfloat16          # bf16 matmul datapath, fp32 LN/softmax/accum

    key = jax.random.PRNGKey(0)
    kx, kp = jax.random.split(key)
    x = jax.random.normal(kx, (SEQ, BATCH, WIDTH), jnp.float32).astype(DTYPE)  # (L,N,D)
    params = init_params(kp, WIDTH, LAYERS, HEADS, dtype=DTYPE)

    fwd = jax.jit(functools.partial(transformer_forward, out_layers=OUT_LAYERS))
    (x_pair, out_tokens) = fwd(x, params)

    jax.block_until_ready(x_pair[0])
    jax.block_until_ready(x_pair[1])
    for t in out_tokens:
        jax.block_until_ready(t)

    assert bool(jnp.all(jnp.isfinite(x_pair[0].astype(jnp.float32))))
    print("KERNEL_OK")
</pallas_src>

<mosaic_0001>
module attributes {stable_mosaic.version = 11 : i64} {
  func.func @_ln_qkv_kernel(%arg0: i32, %arg1: i32, %arg2: memref<1x8x32xbf16, #tpu.memory_space<vmem>>, %arg3: memref<1x32xbf16, #tpu.memory_space<vmem>>, %arg4: memref<1x32xbf16, #tpu.memory_space<vmem>>, %arg5: memref<1x32x24xbf16, #tpu.memory_space<vmem>>, %arg6: memref<1x1x24xbf16, #tpu.memory_space<vmem>>, %arg7: memref<1x1x8x8xbf16, #tpu.memory_space<vmem>>, %arg8: memref<1x1x8x8xbf16, #tpu.memory_space<vmem>>, %arg9: memref<1x1x8x8xbf16, #tpu.memory_space<vmem>>, %arg10: memref<8x32xbf16, #tpu.memory_space<vmem>>) attributes {dimension_semantics = [#tpu.dimension_semantics<parallel>, #tpu.dimension_semantics<arbitrary>], iteration_bounds = array<i64: 2, 4>, scalar_prefetch = 0 : i64, scratch_operands = 1 : i64, tpu.core_type = #tpu.core_type<tc>, window_params = [{transform_indices = @transform_0, window_bounds = array<i64: 1, 8, 32>}, {pipeline_mode = #tpu.pipeline_mode<synchronous>, transform_indices = @transform_1, window_bounds = array<i64: 1, 32>}, {pipeline_mode = #tpu.pipeline_mode<synchronous>, transform_indices = @transform_2, window_bounds = array<i64: 1, 32>}, {transform_indices = @transform_3, window_bounds = array<i64: 1, 32, 24>}, {transform_indices = @transform_4, window_bounds = array<i64: 1, 1, 24>}, {transform_indices = @transform_5, window_bounds = array<i64: 1, 1, 8, 8>}, {transform_indices = @transform_6, window_bounds = array<i64: 1, 1, 8, 8>}, {transform_indices = @transform_7, window_bounds = array<i64: 1, 1, 8, 8>}]} {
    %c0_i32 = arith.constant 0 : i32
    %0 = arith.cmpi eq, %arg1, %c0_i32 : i32
    %1 = arith.extui %0 : i1 to i32
    %c0_i32_0 = arith.constant 0 : i32
    %2 = arith.cmpi ne, %1, %c0_i32_0 : i32
    scf.if %2 {
      %c0_20 = arith.constant 0 : index
      %c0_21 = arith.constant 0 : index
      %c0_22 = arith.constant 0 : index
      %25 = vector.load %arg2[%c0_20, %c0_21, %c0_22] : memref<1x8x32xbf16, #tpu.memory_space<vmem>>, vector<1x8x32xbf16>
      %26 = vector.shape_cast %25 : vector<1x8x32xbf16> to vector<8x32xbf16>
      %27 = arith.extf %26 : vector<8x32xbf16> to vector<8x32xf32>
      %cst_23 = arith.constant dense<0.000000e+00> : vector<8xf32>
      %28 = vector.multi_reduction <add>, %27, %cst_23 [1] : vector<8x32xf32> to vector<8xf32>
      %29 = vector.shape_cast %28 : vector<8xf32> to vector<8x1xf32>
      %cst_24 = arith.constant 3.200000e+01 : f32
      %30 = vector.broadcast %cst_24 : f32 to vector<8x1xf32>
      %31 = arith.divf %29, %30 : vector<8x1xf32>
      %32 = vector.broadcast %31 : vector<8x1xf32> to vector<8x32xf32>
      %33 = arith.subf %27, %32 : vector<8x32xf32>
      %34 = arith.mulf %33, %33 : vector<8x32xf32>
      %cst_25 = arith.constant dense<0.000000e+00> : vector<8xf32>
      %35 = vector.multi_reduction <add>, %34, %cst_25 [1] : vector<8x32xf32> to vector<8xf32>
      %36 = vector.shape_cast %35 : vector<8xf32> to vector<8x1xf32>
      %cst_26 = arith.constant 3.200000e+01 : f32
      %37 = vector.broadcast %cst_26 : f32 to vector<8x1xf32>
      %38 = arith.divf %36, %37 : vector<8x1xf32>
      %39 = vector.broadcast %31 : vector<8x1xf32> to vector<8x32xf32>
      %40 = arith.subf %27, %39 : vector<8x32xf32>
      %cst_27 = arith.constant 9.99999974E-6 : f32
      %41 = vector.broadcast %cst_27 : f32 to vector<8x1xf32>
      %42 = arith.addf %38, %41 : vector<8x1xf32>
      %43 = math.rsqrt %42 : vector<8x1xf32>
      %44 = vector.broadcast %43 : vector<8x1xf32> to vector<8x32xf32>
      %45 = arith.mulf %40, %44 : vector<8x32xf32>
      %c0_28 = arith.constant 0 : index
      %c0_29 = arith.constant 0 : index
      %46 = vector.load %arg3[%c0_28, %c0_29] : memref<1x32xbf16, #tpu.memory_space<vmem>>, vector<1x32xbf16>
      %47 = arith.extf %46 : vector<1x32xbf16> to vector<1x32xf32>
      %48 = vector.broadcast %47 : vector<1x32xf32> to vector<8x32xf32>
      %49 = arith.mulf %45, %48 : vector<8x32xf32>
      %c0_30 = arith.constant 0 : index
      %c0_31 = arith.constant 0 : index
      %50 = vector.load %arg4[%c0_30, %c0_31] : memref<1x32xbf16, #tpu.memory_space<vmem>>, vector<1x32xbf16>
      %51 = arith.extf %50 : vector<1x32xbf16> to vector<1x32xf32>
      %52 = vector.broadcast %51 : vector<1x32xf32> to vector<8x32xf32>
      %53 = arith.addf %49, %52 : vector<8x32xf32>
      %54 = arith.truncf %53 : vector<8x32xf32> to vector<8x32xbf16>
      %c0_32 = arith.constant 0 : index
      %c0_33 = arith.constant 0 : index
      %55 = vector.load %arg10[%c0_32, %c0_33] : memref<8x32xbf16, #tpu.memory_space<vmem>>, vector<8x32xbf16>
      tpu.vector_store %arg10[%c0_32, %c0_33], %54 {strides = array<i32>} : memref<8x32xbf16, #tpu.memory_space<vmem>>, vector<8x32xbf16>,
    } else {
    }
    %c0 = arith.constant 0 : index
    %c0_1 = arith.constant 0 : index
    %3 = vector.load %arg10[%c0, %c0_1] : memref<8x32xbf16, #tpu.memory_space<vmem>>, vector<8x32xbf16>
    %c0_2 = arith.constant 0 : index
    %c0_3 = arith.constant 0 : index
    %c0_4 = arith.constant 0 : index
    %4 = vector.load %arg5[%c0_2, %c0_3, %c0_4] : memref<1x32x24xbf16, #tpu.memory_space<vmem>>, vector<1x32x24xbf16>
    %5 = vector.shape_cast %4 : vector<1x32x24xbf16> to vector<32x24xbf16>
    %cst = arith.constant dense<0.000000e+00> : vector<8x24xf32>
    %6 = tpu.matmul %3, %5, %cst {dimension_numbers = #tpu.dot_dimension_numbers<[1], [0], [0], [1], [0, 0, 1, 1], [], []>} : vector<8x32xbf16>, vector<32x24xbf16>, vector<8x24xf32> -> vector<8x24xf32>
    %c0_5 = arith.constant 0 : index
    %c0_6 = arith.constant 0 : index
    %c0_7 = arith.constant 0 : index
    %7 = vector.load %arg6[%c0_5, %c0_6, %c0_7] : memref<1x1x24xbf16, #tpu.memory_space<vmem>>, vector<1x1x24xbf16>
    %8 = vector.shape_cast %7 : vector<1x1x24xbf16> to vector<1x24xbf16>
    %9 = arith.extf %8 : vector<1x24xbf16> to vector<1x24xf32>
    %10 = vector.broadcast %9 : vector<1x24xf32> to vector<8x24xf32>
    %11 = arith.addf %6, %10 : vector<8x24xf32>
    %12 = arith.truncf %11 : vector<8x24xf32> to vector<8x24xbf16>
    %13 = vector.extract_strided_slice %12 {offsets = [0, 0], sizes = [8, 8], strides = [1, 1]} : vector<8x24xbf16> to vector<8x8xbf16>
    %c0_8 = arith.constant 0 : index
    %c0_9 = arith.constant 0 : index
    %c0_10 = arith.constant 0 : index
    %c0_11 = arith.constant 0 : index
    %14 = vector.load %arg7[%c0_8, %c0_9, %c0_10, %c0_11] : memref<1x1x8x8xbf16, #tpu.memory_space<vmem>>, vector<1x1x8x8xbf16>
    %15 = vector.shape_cast %14 : vector<1x1x8x8xbf16> to vector<8x8xbf16>
    %16 = vector.shape_cast %13 : vector<8x8xbf16> to vector<1x1x8x8xbf16>
    tpu.vector_store %arg7[%c0_8, %c0_9, %c0_10, %c0_11], %16 {strides = array<i32>} : memref<1x1x8x8xbf16, #tpu.memory_space<vmem>>, vector<1x1x8x8xbf16>,
    %17 = vector.extract_strided_slice %12 {offsets = [0, 8], sizes = [8, 8], strides = [1, 1]} : vector<8x24xbf16> to vector<8x8xbf16>
    %c0_12 = arith.constant 0 : index
    %c0_13 = arith.constant 0 : index
    %c0_14 = arith.constant 0 : index
    %c0_15 = arith.constant 0 : index
    %18 = vector.load %arg8[%c0_12, %c0_13, %c0_14, %c0_15] : memref<1x1x8x8xbf16, #tpu.memory_space<vmem>>, vector<1x1x8x8xbf16>
    %19 = vector.shape_cast %18 : vector<1x1x8x8xbf16> to vector<8x8xbf16>
    %20 = vector.shape_cast %17 : vector<8x8xbf16> to vector<1x1x8x8xbf16>
    tpu.vector_store %arg8[%c0_12, %c0_13, %c0_14, %c0_15], %20 {strides = array<i32>} : memref<1x1x8x8xbf16, #tpu.memory_space<vmem>>, vector<1x1x8x8xbf16>,
    %21 = vector.extract_strided_slice %12 {offsets = [0, 16], sizes = [8, 8], strides = [1, 1]} : vector<8x24xbf16> to vector<8x8xbf16>
    %c0_16 = arith.constant 0 : index
    %c0_17 = arith.constant 0 : index
    %c0_18 = arith.constant 0 : index
    %c0_19 = arith.constant 0 : index
    %22 = vector.load %arg9[%c0_16, %c0_17, %c0_18, %c0_19] : memref<1x1x8x8xbf16, #tpu.memory_space<vmem>>, vector<1x1x8x8xbf16>
    %23 = vector.shape_cast %22 : vector<1x1x8x8xbf16> to vector<8x8xbf16>
    %24 = vector.shape_cast %21 : vector<8x8xbf16> to vector<1x1x8x8xbf16>
    tpu.vector_store %arg9[%c0_16, %c0_17, %c0_18, %c0_19], %24 {strides = array<i32>} : memref<1x1x8x8xbf16, #tpu.memory_space<vmem>>, vector<1x1x8x8xbf16>,
    return
  }
  func.func @transform_0(%arg0: i32, %arg1: i32) -> (i32, i32, i32) {
    %c0_i32 = arith.constant 0 : i32
    %c0_i32_0 = arith.constant 0 : i32
    %c0_i32_1 = arith.constant 0 : i32
    return %arg0, %c0_i32, %c0_i32_0 : i32, i32, i32
  }
  func.func @transform_1(%arg0: i32, %arg1: i32) -> (i32, i32) {
    %c0_i32 = arith.constant 0 : i32
    %c0_i32_0 = arith.constant 0 : i32
    %c0_i32_1 = arith.constant 0 : i32
    return %c0_i32, %c0_i32_0 : i32, i32
  }
  func.func @transform_2(%arg0: i32, %arg1: i32) -> (i32, i32) {
    %c0_i32 = arith.constant 0 : i32
    %c0_i32_0 = arith.constant 0 : i32
    %c0_i32_1 = arith.constant 0 : i32
    return %c0_i32, %c0_i32_0 : i32, i32
  }
  func.func @transform_3(%arg0: i32, %arg1: i32) -> (i32, i32, i32) {
    %c0_i32 = arith.constant 0 : i32
    %c0_i32_0 = arith.constant 0 : i32
    %c0_i32_1 = arith.constant 0 : i32
    return %arg1, %c0_i32, %c0_i32_0 : i32, i32, i32
  }
  func.func @transform_4(%arg0: i32, %arg1: i32) -> (i32, i32, i32) {
    %c0_i32 = arith.constant 0 : i32
    %c0_i32_0 = arith.constant 0 : i32
    %c0_i32_1 = arith.constant 0 : i32
    return %arg1, %c0_i32, %c0_i32_0 : i32, i32, i32
  }
  func.func @transform_5(%arg0: i32, %arg1: i32) -> (i32, i32, i32, i32) {
    %c0_i32 = arith.constant 0 : i32
    %c0_i32_0 = arith.constant 0 : i32
    %c0_i32_1 = arith.constant 0 : i32
    return %arg0, %arg1, %c0_i32, %c0_i32_0 : i32, i32, i32, i32
  }
  func.func @transform_6(%arg0: i32, %arg1: i32) -> (i32, i32, i32, i32) {
    %c0_i32 = arith.constant 0 : i32
    %c0_i32_0 = arith.constant 0 : i32
    %c0_i32_1 = arith.constant 0 : i32
    return %arg0, %arg1, %c0_i32, %c0_i32_0 : i32, i32, i32, i32
  }
  func.func @transform_7(%arg0: i32, %arg1: i32) -> (i32, i32, i32, i32) {
    %c0_i32 = arith.constant 0 : i32
    %c0_i32_0 = arith.constant 0 : i32
    %c0_i32_1 = arith.constant 0 : i32
    return %arg0, %arg1, %c0_i32, %c0_i32_0 : i32, i32, i32, i32
  }
}

module attributes {stable_mosaic.version = 11 : i64} {
  func.func @_mlp_kernel(%arg0: i32, %arg1: i32, %arg2: memref<16x32xbf16, #tpu.memory_space<vmem>>, %arg3: memref<1x32xbf16, #tpu.memory_space<vmem>>, %arg4: memref<1x32xbf16, #tpu.memory_space<vmem>>, %arg5: memref<32x128xbf16, #tpu.memory_space<vmem>>, %arg6: memref<1x128xbf16, #tpu.memory_space<vmem>>, %arg7: memref<128x32xbf16, #tpu.memory_space<vmem>>, %arg8: memref<1x32xbf16, #tpu.memory_space<vmem>>, %arg9: memref<16x32xbf16, #tpu.memory_space<vmem>>, %arg10: memref<16x32xf32, #tpu.memory_space<vmem>>, %arg11: memref<16x32xbf16, #tpu.memory_space<vmem>>) attributes {dimension_semantics = [#tpu.dimension_semantics<parallel>, #tpu.dimension_semantics<arbitrary>], iteration_bounds = array<i64: 1, 1>, scalar_prefetch = 0 : i64, scratch_operands = 2 : i64, tpu.core_type = #tpu.core_type<tc>, window_params = [{transform_indices = @transform_0, window_bounds = array<i64: 16, 32>}, {pipeline_mode = #tpu.pipeline_mode<synchronous>, transform_indices = @transform_1, window_bounds = array<i64: 1, 32>}, {pipeline_mode = #tpu.pipeline_mode<synchronous>, transform_indices = @transform_2, window_bounds = array<i64: 1, 32>}, {transform_indices = @transform_3, window_bounds = array<i64: 32, 128>}, {transform_indices = @transform_4, window_bounds = array<i64: 1, 128>}, {transform_indices = @transform_5, window_bounds = array<i64: 128, 32>}, {pipeline_mode = #tpu.pipeline_mode<synchronous>, transform_indices = @transform_6, window_bounds = array<i64: 1, 32>}, {transform_indices = @transform_7, window_bounds = array<i64: 16, 32>}]} {
    %c0_i32 = arith.constant 0 : i32
    %0 = arith.cmpi eq, %arg1, %c0_i32 : i32
    %1 = arith.extui %0 : i1 to i32
    %c0_i32_0 = arith.constant 0 : i32
    %2 = arith.cmpi ne, %1, %c0_i32_0 : i32
    scf.if %2 {
      %c0_17 = arith.constant 0 : index
      %c0_18 = arith.constant 0 : index
      %27 = vector.load %arg2[%c0_17, %c0_18] : memref<16x32xbf16, #tpu.memory_space<vmem>>, vector<16x32xbf16>
      %28 = arith.extf %27 : vector<16x32xbf16> to vector<16x32xf32>
      %cst_19 = arith.constant dense<0.000000e+00> : vector<16xf32>
      %29 = vector.multi_reduction <add>, %28, %cst_19 [1] : vector<16x32xf32> to vector<16xf32>
      %30 = vector.shape_cast %29 : vector<16xf32> to vector<16x1xf32>
      %cst_20 = arith.constant 3.200000e+01 : f32
      %31 = vector.broadcast %cst_20 : f32 to vector<16x1xf32>
      %32 = arith.divf %30, %31 : vector<16x1xf32>
      %33 = vector.broadcast %32 : vector<16x1xf32> to vector<16x32xf32>
      %34 = arith.subf %28, %33 : vector<16x32xf32>
      %35 = arith.mulf %34, %34 : vector<16x32xf32>
      %cst_21 = arith.constant dense<0.000000e+00> : vector<16xf32>
      %36 = vector.multi_reduction <add>, %35, %cst_21 [1] : vector<16x32xf32> to vector<16xf32>
      %37 = vector.shape_cast %36 : vector<16xf32> to vector<16x1xf32>
      %cst_22 = arith.constant 3.200000e+01 : f32
      %38 = vector.broadcast %cst_22 : f32 to vector<16x1xf32>
      %39 = arith.divf %37, %38 : vector<16x1xf32>
      %40 = vector.broadcast %32 : vector<16x1xf32> to vector<16x32xf32>
      %41 = arith.subf %28, %40 : vector<16x32xf32>
      %cst_23 = arith.constant 9.99999974E-6 : f32
      %42 = vector.broadcast %cst_23 : f32 to vector<16x1xf32>
      %43 = arith.addf %39, %42 : vector<16x1xf32>
      %44 = math.rsqrt %43 : vector<16x1xf32>
      %45 = vector.broadcast %44 : vector<16x1xf32> to vector<16x32xf32>
      %46 = arith.mulf %41, %45 : vector<16x32xf32>
      %c0_24 = arith.constant 0 : index
      %c0_25 = arith.constant 0 : index
      %47 = vector.load %arg3[%c0_24, %c0_25] : memref<1x32xbf16, #tpu.memory_space<vmem>>, vector<1x32xbf16>
      %48 = arith.extf %47 : vector<1x32xbf16> to vector<1x32xf32>
      %49 = vector.broadcast %48 : vector<1x32xf32> to vector<16x32xf32>
      %50 = arith.mulf %46, %49 : vector<16x32xf32>
      %c0_26 = arith.constant 0 : index
      %c0_27 = arith.constant 0 : index
      %51 = vector.load %arg4[%c0_26, %c0_27] : memref<1x32xbf16, #tpu.memory_space<vmem>>, vector<1x32xbf16>
      %52 = arith.extf %51 : vector<1x32xbf16> to vector<1x32xf32>
      %53 = vector.broadcast %52 : vector<1x32xf32> to vector<16x32xf32>
      %54 = arith.addf %50, %53 : vector<16x32xf32>
      %55 = arith.truncf %54 : vector<16x32xf32> to vector<16x32xbf16>
      %c0_28 = arith.constant 0 : index
      %c0_29 = arith.constant 0 : index
      %56 = vector.load %arg11[%c0_28, %c0_29] : memref<16x32xbf16, #tpu.memory_space<vmem>>, vector<16x32xbf16>
      tpu.vector_store %arg11[%c0_28, %c0_29], %55 {strides = array<i32>} : memref<16x32xbf16, #tpu.memory_space<vmem>>, vector<16x32xbf16>,
      %cst_30 = arith.constant 0.000000e+00 : f32
      %57 = vector.broadcast %cst_30 : f32 to vector<16x32xf32>
      %c0_31 = arith.constant 0 : index
      %c0_32 = arith.constant 0 : index
      %58 = vector.load %arg10[%c0_31, %c0_32] : memref<16x32xf32, #tpu.memory_space<vmem>>, vector<16x32xf32>
      tpu.vector_store %arg10[%c0_31, %c0_32], %57 {strides = array<i32>} : memref<16x32xf32, #tpu.memory_space<vmem>>, vector<16x32xf32>,
    } else {
    }
    %c0 = arith.constant 0 : index
    %c0_1 = arith.constant 0 : index
    %3 = vector.load %arg11[%c0, %c0_1] : memref<16x32xbf16, #tpu.memory_space<vmem>>, vector<16x32xbf16>
    %c0_2 = arith.constant 0 : index
    %c0_3 = arith.constant 0 : index
    %4 = vector.load %arg5[%c0_2, %c0_3] : memref<32x128xbf16, #tpu.memory_space<vmem>>, vector<32x128xbf16>
    %cst = arith.constant dense<0.000000e+00> : vector<16x128xf32>
    %5 = tpu.matmul %3, %4, %cst {dimension_numbers = #tpu.dot_dimension_numbers<[1], [0], [0], [1], [0, 0, 1, 1], [], []>} : vector<16x32xbf16>, vector<32x128xbf16>, vector<16x128xf32> -> vector<16x128xf32>
    %c0_4 = arith.constant 0 : index
    %c0_5 = arith.constant 0 : index
    %6 = vector.load %arg6[%c0_4, %c0_5] : memref<1x128xbf16, #tpu.memory_space<vmem>>, vector<1x128xbf16>
    %7 = arith.extf %6 : vector<1x128xbf16> to vector<1x128xf32>
    %8 = vector.broadcast %7 : vector<1x128xf32> to vector<16x128xf32>
    %9 = arith.addf %5, %8 : vector<16x128xf32>
    %cst_6 = arith.constant 1.702000e+00 : f32
    %10 = vector.broadcast %cst_6 : f32 to vector<16x128xf32>
    %11 = arith.mulf %10, %9 : vector<16x128xf32>
    %12 = arith.negf %11 : vector<16x128xf32>
    %13 = math.exp %12 : vector<16x128xf32>
    %cst_7 = arith.constant 1.000000e+00 : f32
    %14 = vector.broadcast %cst_7 : f32 to vector<16x128xf32>
    %15 = arith.addf %14, %13 : vector<16x128xf32>
    %16 = arith.divf %14, %15 : vector<16x128xf32>
    %17 = arith.mulf %9, %16 : vector<16x128xf32>
    %c0_8 = arith.constant 0 : index
    %c0_9 = arith.constant 0 : index
    %18 = vector.load %arg10[%c0_8, %c0_9] : memref<16x32xf32, #tpu.memory_space<vmem>>, vector<16x32xf32>
    %19 = arith.truncf %17 : vector<16x128xf32> to vector<16x128xbf16>
    %c0_10 = arith.constant 0 : index
    %c0_11 = arith.constant 0 : index
    %20 = vector.load %arg7[%c0_10, %c0_11] : memref<128x32xbf16, #tpu.memory_space<vmem>>, vector<128x32xbf16>
    %cst_12 = arith.constant dense<0.000000e+00> : vector<16x32xf32>
    %21 = tpu.matmul %19, %20, %cst_12 {dimension_numbers = #tpu.dot_dimension_numbers<[1], [0], [0], [1], [0, 0, 1, 1], [], []>} : vector<16x128xbf16>, vector<128x32xbf16>, vector<16x32xf32> -> vector<16x32xf32>
    %22 = arith.addf %18, %21 : vector<16x32xf32>
    %c0_13 = arith.constant 0 : index
    %c0_14 = arith.constant 0 : index
    %23 = vector.load %arg10[%c0_13, %c0_14] : memref<16x32xf32, #tpu.memory_space<vmem>>, vector<16x32xf32>
    tpu.vector_store %arg10[%c0_13, %c0_14], %22 {strides = array<i32>} : memref<16x32xf32, #tpu.memory_space<vmem>>, vector<16x32xf32>,
    %c0_i32_15 = arith.constant 0 : i32
    %24 = arith.cmpi eq, %arg1, %c0_i32_15 : i32
    %25 = arith.extui %24 : i1 to i32
    %c0_i32_16 = arith.constant 0 : i32
    %26 = arith.cmpi ne, %25, %c0_i32_16 : i32
    scf.if %26 {
      %c0_17 = arith.constant 0 : index
      %c0_18 = arith.constant 0 : index
      %27 = vector.load %arg10[%c0_17, %c0_18] : memref<16x32xf32, #tpu.memory_space<vmem>>, vector<16x32xf32>
      %c0_19 = arith.constant 0 : index
      %c0_20 = arith.constant 0 : index
      %28 = vector.load %arg8[%c0_19, %c0_20] : memref<1x32xbf16, #tpu.memory_space<vmem>>, vector<1x32xbf16>
      %29 = arith.extf %28 : vector<1x32xbf16> to vector<1x32xf32>
      %30 = vector.broadcast %29 : vector<1x32xf32> to vector<16x32xf32>
      %31 = arith.addf %27, %30 : vector<16x32xf32>
      %c0_21 = arith.constant 0 : index
      %c0_22 = arith.constant 0 : index
      %32 = vector.load %arg2[%c0_21, %c0_22] : memref<16x32xbf16, #tpu.memory_space<vmem>>, vector<16x32xbf16>
      %33 = arith.extf %32 : vector<16x32xbf16> to vector<16x32xf32>
      %34 = arith.addf %31, %33 : vector<16x32xf32>
      %35 = arith.truncf %34 : vector<16x32xf32> to vector<16x32xbf16>
      %c0_23 = arith.constant 0 : index
      %c0_24 = arith.constant 0 : index
      %36 = vector.load %arg9[%c0_23, %c0_24] : memref<16x32xbf16, #tpu.memory_space<vmem>>, vector<16x32xbf16>
      tpu.vector_store %arg9[%c0_23, %c0_24], %35 {strides = array<i32>} : memref<16x32xbf16, #tpu.memory_space<vmem>>, vector<16x32xbf16>,
    } else {
    }
    return
  }
  func.func @transform_0(%arg0: i32, %arg1: i32) -> (i32, i32) {
    %c0_i32 = arith.constant 0 : i32
    %c0_i32_0 = arith.constant 0 : i32
    return %arg0, %c0_i32 : i32, i32
  }
  func.func @transform_1(%arg0: i32, %arg1: i32) -> (i32, i32) {
    %c0_i32 = arith.constant 0 : i32
    %c0_i32_0 = arith.constant 0 : i32
    %c0_i32_1 = arith.constant 0 : i32
    return %c0_i32, %c0_i32_0 : i32, i32
  }
  func.func @transform_2(%arg0: i32, %arg1: i32) -> (i32, i32) {
    %c0_i32 = arith.constant 0 : i32
    %c0_i32_0 = arith.constant 0 : i32
    %c0_i32_1 = arith.constant 0 : i32
    return %c0_i32, %c0_i32_0 : i32, i32
  }
  func.func @transform_3(%arg0: i32, %arg1: i32) -> (i32, i32) {
    %c0_i32 = arith.constant 0 : i32
    %c0_i32_0 = arith.constant 0 : i32
    return %c0_i32, %arg1 : i32, i32
  }
  func.func @transform_4(%arg0: i32, %arg1: i32) -> (i32, i32) {
    %c0_i32 = arith.constant 0 : i32
    %c0_i32_0 = arith.constant 0 : i32
    return %c0_i32, %arg1 : i32, i32
  }
  func.func @transform_5(%arg0: i32, %arg1: i32) -> (i32, i32) {
    %c0_i32 = arith.constant 0 : i32
    %c0_i32_0 = arith.constant 0 : i32
    return %arg1, %c0_i32 : i32, i32
  }
  func.func @transform_6(%arg0: i32, %arg1: i32) -> (i32, i32) {
    %c0_i32 = arith.constant 0 : i32
    %c0_i32_0 = arith.constant 0 : i32
    %c0_i32_1 = arith.constant 0 : i32
    return %c0_i32, %c0_i32_0 : i32, i32
  }
  func.func @transform_7(%arg0: i32, %arg1: i32) -> (i32, i32) {
    %c0_i32 = arith.constant 0 : i32
    %c0_i32_0 = arith.constant 0 : i32
    return %arg0, %c0_i32 : i32, i32
  }
}

module attributes {stable_mosaic.version = 11 : i64} {
  func.func @_attn_out_kernel(%arg0: i32, %arg1: i32, %arg2: memref<1x1x8x8xbf16, #tpu.memory_space<vmem>>, %arg3: memref<1x1x8x8xbf16, #tpu.memory_space<vmem>>, %arg4: memref<1x1x8x8xbf16, #tpu.memory_space<vmem>>, %arg5: memref<1x8x32xbf16, #tpu.memory_space<vmem>>, %arg6: memref<1x32xbf16, #tpu.memory_space<vmem>>, %arg7: memref<1x8x32xbf16, #tpu.memory_space<vmem>>, %arg8: memref<1x8x32xbf16, #tpu.memory_space<vmem>>, %arg9: memref<8x32xf32, #tpu.memory_space<vmem>>) attributes {dimension_semantics = [#tpu.dimension_semantics<parallel>, #tpu.dimension_semantics<arbitrary>], iteration_bounds = array<i64: 2, 4>, scalar_prefetch = 0 : i64, scratch_operands = 1 : i64, tpu.core_type = #tpu.core_type<tc>, window_params = [{transform_indices = @transform_0, window_bounds = array<i64: 1, 1, 8, 8>}, {transform_indices = @transform_1, window_bounds = array<i64: 1, 1, 8, 8>}, {transform_indices = @transform_2, window_bounds = array<i64: 1, 1, 8, 8>}, {transform_indices = @transform_3, window_bounds = array<i64: 1, 8, 32>}, {pipeline_mode = #tpu.pipeline_mode<synchronous>, transform_indices = @transform_4, window_bounds = array<i64: 1, 32>}, {transform_indices = @transform_5, window_bounds = array<i64: 1, 8, 32>}, {transform_indices = @transform_6, window_bounds = array<i64: 1, 8, 32>}]} {
    %c0_i32 = arith.constant 0 : i32
    %0 = arith.cmpi eq, %arg1, %c0_i32 : i32
    %1 = arith.extui %0 : i1 to i32
    %c0_i32_0 = arith.constant 0 : i32
    %2 = arith.cmpi ne, %1, %c0_i32_0 : i32
    scf.if %2 {
      %c0_25 = arith.constant 0 : index
      %c0_26 = arith.constant 0 : index
      %c0_27 = arith.constant 0 : index
      %34 = vector.load %arg7[%c0_25, %c0_26, %c0_27] : memref<1x8x32xbf16, #tpu.memory_space<vmem>>, vector<1x8x32xbf16>
      %35 = vector.shape_cast %34 : vector<1x8x32xbf16> to vector<8x32xbf16>
      %36 = arith.extf %35 : vector<8x32xbf16> to vector<8x32xf32>
      %c0_28 = arith.constant 0 : index
      %c0_29 = arith.constant 0 : index
      %37 = vector.load %arg6[%c0_28, %c0_29] : memref<1x32xbf16, #tpu.memory_space<vmem>>, vector<1x32xbf16>
      %38 = arith.extf %37 : vector<1x32xbf16> to vector<1x32xf32>
      %39 = vector.broadcast %38 : vector<1x32xf32> to vector<8x32xf32>
      %40 = arith.addf %36, %39 : vector<8x32xf32>
      %c0_30 = arith.constant 0 : index
      %c0_31 = arith.constant 0 : index
      %41 = vector.load %arg9[%c0_30, %c0_31] : memref<8x32xf32, #tpu.memory_space<vmem>>, vector<8x32xf32>
      tpu.vector_store %arg9[%c0_30, %c0_31], %40 {strides = array<i32>} : memref<8x32xf32, #tpu.memory_space<vmem>>, vector<8x32xf32>,
    } else {
    }
    %c0 = arith.constant 0 : index
    %c0_1 = arith.constant 0 : index
    %c0_2 = arith.constant 0 : index
    %c0_3 = arith.constant 0 : index
    %3 = vector.load %arg2[%c0, %c0_1, %c0_2, %c0_3] : memref<1x1x8x8xbf16, #tpu.memory_space<vmem>>, vector<1x1x8x8xbf16>
    %4 = vector.shape_cast %3 : vector<1x1x8x8xbf16> to vector<8x8xbf16>
    %cst = arith.constant 3.535160e-01 : bf16
    %5 = vector.broadcast %cst : bf16 to vector<8x8xbf16>
    %6 = arith.mulf %4, %5 : vector<8x8xbf16>
    %c0_4 = arith.constant 0 : index
    %c0_5 = arith.constant 0 : index
    %c0_6 = arith.constant 0 : index
    %c0_7 = arith.constant 0 : index
    %7 = vector.load %arg3[%c0_4, %c0_5, %c0_6, %c0_7] : memref<1x1x8x8xbf16, #tpu.memory_space<vmem>>, vector<1x1x8x8xbf16>
    %8 = vector.shape_cast %7 : vector<1x1x8x8xbf16> to vector<8x8xbf16>
    %cst_8 = arith.constant dense<0.000000e+00> : vector<8x8xf32>
    %9 = tpu.matmul %6, %8, %cst_8 {dimension_numbers = #tpu.dot_dimension_numbers<[1], [1], [0], [0], [0, 0, 1, 0], [], []>} : vector<8x8xbf16>, vector<8x8xbf16>, vector<8x8xf32> -> vector<8x8xf32>
    %cst_9 = arith.constant dense<0xFF800000> : vector<8xf32>
    %10 = vector.multi_reduction <maximumf>, %9, %cst_9 [1] : vector<8x8xf32> to vector<8xf32>
    %11 = vector.shape_cast %10 : vector<8xf32> to vector<8x1xf32>
    %12 = vector.broadcast %11 : vector<8x1xf32> to vector<8x8xf32>
    %13 = arith.subf %9, %12 : vector<8x8xf32>
    %14 = math.exp %13 : vector<8x8xf32>
    %cst_10 = arith.constant dense<0.000000e+00> : vector<8xf32>
    %15 = vector.multi_reduction <add>, %14, %cst_10 [1] : vector<8x8xf32> to vector<8xf32>
    %16 = vector.shape_cast %15 : vector<8xf32> to vector<8x1xf32>
    %17 = tpu.reciprocal %16 {approx = true} : vector<8x1xf32> -> vector<8x1xf32>
    %18 = vector.broadcast %17 : vector<8x1xf32> to vector<8x8xf32>
    %19 = arith.mulf %14, %18 : vector<8x8xf32>
    %20 = arith.truncf %19 : vector<8x8xf32> to vector<8x8xbf16>
    %c0_11 = arith.constant 0 : index
    %c0_12 = arith.constant 0 : index
    %c0_13 = arith.constant 0 : index
    %c0_14 = arith.constant 0 : index
    %21 = vector.load %arg4[%c0_11, %c0_12, %c0_13, %c0_14] : memref<1x1x8x8xbf16, #tpu.memory_space<vmem>>, vector<1x1x8x8xbf16>
    %22 = vector.shape_cast %21 : vector<1x1x8x8xbf16> to vector<8x8xbf16>
    %cst_15 = arith.constant dense<0.000000e+00> : vector<8x8xf32>
    %23 = tpu.matmul %20, %22, %cst_15 {dimension_numbers = #tpu.dot_dimension_numbers<[1], [0], [0], [1], [0, 0, 1, 1], [], []>} : vector<8x8xbf16>, vector<8x8xbf16>, vector<8x8xf32> -> vector<8x8xf32>
    %c0_16 = arith.constant 0 : index
    %c0_17 = arith.constant 0 : index
    %24 = vector.load %arg9[%c0_16, %c0_17] : memref<8x32xf32, #tpu.memory_space<vmem>>, vector<8x32xf32>
    %25 = arith.truncf %23 : vector<8x8xf32> to vector<8x8xbf16>
    %c0_18 = arith.constant 0 : index
    %c0_19 = arith.constant 0 : index
    %c0_20 = arith.constant 0 : index
    %26 = vector.load %arg5[%c0_18, %c0_19, %c0_20] : memref<1x8x32xbf16, #tpu.memory_space<vmem>>, vector<1x8x32xbf16>
    %27 = vector.shape_cast %26 : vector<1x8x32xbf16> to vector<8x32xbf16>
    %cst_21 = arith.constant dense<0.000000e+00> : vector<8x32xf32>
    %28 = tpu.matmul %25, %27, %cst_21 {dimension_numbers = #tpu.dot_dimension_numbers<[1], [0], [0], [1], [0, 0, 1, 1], [], []>} : vector<8x8xbf16>, vector<8x32xbf16>, vector<8x32xf32> -> vector<8x32xf32>
    %29 = arith.addf %24, %28 : vector<8x32xf32>
    %c0_22 = arith.constant 0 : index
    %c0_23 = arith.constant 0 : index
    %30 = vector.load %arg9[%c0_22, %c0_23] : memref<8x32xf32, #tpu.memory_space<vmem>>, vector<8x32xf32>
    tpu.vector_store %arg9[%c0_22, %c0_23], %29 {strides = array<i32>} : memref<8x32xf32, #tpu.memory_space<vmem>>, vector<8x32xf32>,
    %c3_i32 = arith.constant 3 : i32
    %31 = arith.cmpi eq, %arg1, %c3_i32 : i32
    %32 = arith.extui %31 : i1 to i32
    %c0_i32_24 = arith.constant 0 : i32
    %33 = arith.cmpi ne, %32, %c0_i32_24 : i32
    scf.if %33 {
      %c0_25 = arith.constant 0 : index
      %c0_26 = arith.constant 0 : index
      %34 = vector.load %arg9[%c0_25, %c0_26] : memref<8x32xf32, #tpu.memory_space<vmem>>, vector<8x32xf32>
      %35 = arith.truncf %34 : vector<8x32xf32> to vector<8x32xbf16>
      %c0_27 = arith.constant 0 : index
      %c0_28 = arith.constant 0 : index
      %c0_29 = arith.constant 0 : index
      %36 = vector.load %arg8[%c0_27, %c0_28, %c0_29] : memref<1x8x32xbf16, #tpu.memory_space<vmem>>, vector<1x8x32xbf16>
      %37 = vector.shape_cast %36 : vector<1x8x32xbf16> to vector<8x32xbf16>
      %38 = vector.shape_cast %35 : vector<8x32xbf16> to vector<1x8x32xbf16>
      tpu.vector_store %arg8[%c0_27, %c0_28, %c0_29], %38 {strides = array<i32>} : memref<1x8x32xbf16, #tpu.memory_space<vmem>>, vector<1x8x32xbf16>,
    } else {
    }
    return
  }
  func.func @transform_0(%arg0: i32, %arg1: i32) -> (i32, i32, i32, i32) {
    %c0_i32 = arith.constant 0 : i32
    %c0_i32_0 = arith.constant 0 : i32
    %c0_i32_1 = arith.constant 0 : i32
    return %arg0, %arg1, %c0_i32, %c0_i32_0 : i32, i32, i32, i32
  }
  func.func @transform_1(%arg0: i32, %arg1: i32) -> (i32, i32, i32, i32) {
    %c0_i32 = arith.constant 0 : i32
    %c0_i32_0 = arith.constant 0 : i32
    %c0_i32_1 = arith.constant 0 : i32
    return %arg0, %arg1, %c0_i32, %c0_i32_0 : i32, i32, i32, i32
  }
  func.func @transform_2(%arg0: i32, %arg1: i32) -> (i32, i32, i32, i32) {
    %c0_i32 = arith.constant 0 : i32
    %c0_i32_0 = arith.constant 0 : i32
    %c0_i32_1 = arith.constant 0 : i32
    return %arg0, %arg1, %c0_i32, %c0_i32_0 : i32, i32, i32, i32
  }
  func.func @transform_3(%arg0: i32, %arg1: i32) -> (i32, i32, i32) {
    %c0_i32 = arith.constant 0 : i32
    %c0_i32_0 = arith.constant 0 : i32
    %c0_i32_1 = arith.constant 0 : i32
    return %arg1, %c0_i32, %c0_i32_0 : i32, i32, i32
  }
  func.func @transform_4(%arg0: i32, %arg1: i32) -> (i32, i32) {
    %c0_i32 = arith.constant 0 : i32
    %c0_i32_0 = arith.constant 0 : i32
    %c0_i32_1 = arith.constant 0 : i32
    return %c0_i32, %c0_i32_0 : i32, i32
  }
  func.func @transform_5(%arg0: i32, %arg1: i32) -> (i32, i32, i32) {
    %c0_i32 = arith.constant 0 : i32
    %c0_i32_0 = arith.constant 0 : i32
    %c0_i32_1 = arith.constant 0 : i32
    return %arg0, %c0_i32, %c0_i32_0 : i32, i32, i32
  }
  func.func @transform_6(%arg0: i32, %arg1: i32) -> (i32, i32, i32) {
    %c0_i32 = arith.constant 0 : i32
    %c0_i32_0 = arith.constant 0 : i32
    %c0_i32_1 = arith.constant 0 : i32
    return %arg0, %c0_i32, %c0_i32_0 : i32, i32, i32
  }
}

</mosaic_0001>

<bundles_post_ra>
// kernel: transformer_forward.6
= control target key start
LH: loop header
LB: loop body
LE: loop exit
PB: predicated region body
PF: predicated region fallthrough
CT: control target
= control target key end

     0   :  { %s852_s24 = smov 0   ;;  %s854_s25 = smov 0   ;;  %s960_s0 = inlined_call_operand.vmem [shape: bf16[2,8,32], index: 0, kind: input, shape index: {}]   ;;  %s961_s1 = inlined_call_operand.vmem [shape: bf16[1,32], index: 1, kind: input, shape index: {}]   ;;  %s962_s2 = inlined_call_operand.vmem [shape: bf16[1,32], index: 2, kind: input, shape index: {}]   ;;  %s963_s3 = inlined_call_operand.vmem [shape: bf16[4,32,24], index: 3, kind: input, shape index: {}]   ;;  %s964_s4 = inlined_call_operand.vmem [shape: bf16[4,1,24], index: 4, kind: input, shape index: {}]   ;;  %s965_s5 = inlined_call_operand.vmem [shape: bf16[2,4,8,8], index: 5, kind: output, shape index: {0}]   ;;  %s966_s6 = inlined_call_operand.vmem [shape: bf16[2,4,8,8], index: 6, kind: output, shape index: {1}]   ;;  %s967_s7 = inlined_call_operand.vmem [shape: bf16[2,4,8,8], index: 7, kind: output, shape index: {2}]  }
   0x1   :  { %968 = sst [smem:[#allocation3_spill]] %s960_s0  ;;  %s856_s26 = smov 0  }
   0x2   :  { %s858_s27 = smov 0   ;;  %s860_s28 = smov 0  }
   0x3 LB: > { %s27_s29 = sadd.s32 1, %s798_s26  ;;  %s30_s30 = sadd.s32 1, %s802_s27  ;;  %s806_s28 = sphi %s860_s28, %s18_s28   ;;  %s802_s27 = sphi %s858_s27, %s973_s27   ;;  %s798_s26 = sphi %s856_s26, %s972_s26   ;;  %s794_s25 = sphi %s854_s25, %s971_s25   ;;  %s790_s24 = sphi %s852_s24, %s970_s24  }
   0x4   : > { %p28_p0 = scmp.ge.s32.totalorder %s27_s29, 4  ;;  %p690_p1 = scmp.ge.s32.totalorder %s806_s28, 1 }
   0x5   : > { %p277_p2 = scmp.lt.s32.totalorder %s806_s28, 9 }
   0x6   : > { %s975_s29 = smov (%p28_p0, %s27_s29), 0  ;;  %s977_s30 = smov (!%p28_p0, %s30_s30), %s802_s27 }
   0x7   : > { %p278_p3 = pnand %p690_p1, %p277_p2  ;;  %p32_p4 = scmp.ge.s32.totalorder %s977_s30, 2 }
   0x8   : > { %p335_p5 = scmp.lt.s32.totalorder (!%p278_p3), %s794_s25, 1  ;;  %p339_p6 = scmp.lt.s32.totalorder (!%p278_p3), %s790_s24, 3 }
   0x9   : > { %s979_s30 = smov (%p32_p4, %s977_s30), 0  ;;  %281 = sbr.rel (%p278_p3) target bundleno = 684 (0x2ac), region = 40 }
   0xa   : > { %s969_s0 = sld [smem:[#allocation3_spill]] (!%p278_p3)  ;;  %p700_p7 = scmp.ne.s32.totalorder (!%p278_p3), %s790_s24, 0 }
  0x10   : > { %s981_s25 = smov (!%p335_p5, %s794_s25), 1  ;;  %vm378_vm0 = vcmask (!%p700_p7), 261120   ;;  %v395_v10 = vlaneseq (!%p700_p7)  ;;  %v393_v13 = vld [vmem:[%s961_s1] sm:$0x1] (!%p700_p7)  ;;  %vm408_vm1 = vcmask (!%p700_p7), 257024  }
  0x11   : > { %s886_s8 = scalar_select %p339_p6, %s790_s24, 3 }
  0x12   : > { %s691_s9 = sshll.u32 %s981_s25, 2  ;;  %375 = sbr.rel (%p700_p7) target bundleno = 339 (0x153), region = 44  ;;  %v396_v12 = vshrl.u32 (!%p700_p7), %v395_v10, 7  ;;  %v400_v14 = vld [vmem:[%s962_s2] sm:$0x1] (!%p700_p7)  ;;  %v394_v15 = vunpack.c.l.bf16 (!%p700_p7), %v393_v13 }
  0x13   : > { %s338_s12 = scalar_lea.vmem %s969_s0, %s691_s9  ;;  %s707_s13 = sshll.u32 %s886_s8, 4  ;;  %v401_v17 = vunpack.c.l.bf16 (!%p700_p7), %v400_v14 }
  0x14   : > { %s895_s16 = scalar_lea.vmem %s963_s3, %s707_s13  ;;  %s346_s19 = scalar_lea.vmem %s964_s4, %s886_s8  ;;  %v376_v0 = vld [vmem:[%s338_s12] sm:$0xf] (!%p700_p7)  ;;  %v397_v16 = vsub.s32 (!%p700_p7), 0, %v396_v12 }
  0x15   : > { %s352_s20 = sadd.s32 %s691_s9, %s886_s8  ;;  %v377_v1 = vunpack.c.l.bf16 (!%p700_p7), %v376_v0 }
  0x16   : > { %s902_s21 = sshll.u32 %s352_s20, 2  ;;  %v398_v18 = vrot.slane (!%p700_p7), %v394_v15, %v397_v16  ;;  %v405_v20 = vrot.slane (!%p700_p7), %v401_v17, %v397_v16 }
  0x17   : > { %s354_s25 = scalar_lea.vmem %s965_s5, %s902_s21  ;;  %s362_s14 = scalar_lea.vmem %s966_s6, %s902_s21  ;;  %v379_v2 = vsel (!%p700_p7), %vm378_vm0, %v377_v1, 0.0 }
  0x18   : > { %s370_s0 = scalar_lea.vmem %s967_s7, %s902_s21  ;;  %380 = vadd.xlane.f32.xlu0 (!%p700_p7), %v379_v2 }
  0xa5   : > { %v381_v3 = vpop.xlane.xlu0 %380 }
  0xa6   : > { %v383_v4 = vmul.f32 0.03125, %v381_v3 }
  0xa8   : > { %v384_v5 = vsub.f32 %v377_v1, %v383_v4 }
  0xaa   : > { %v385_v6 = vmul.f32 %v384_v5, %v384_v5 }
  0xac   : > { %v386_v7 = vsel %vm378_vm0, %v385_v6, 0.0 }
  0xad   : > { %387 = vadd.xlane.f32.xlu0 %v386_v7 }
 0x13a   : > { %v388_v8 = vpop.xlane.xlu0 %387 }
 0x13b   : > { %v389_v9 = vmul.f32 0.03125, %v388_v8 }
 0x13d   : > { %v390_v11 = vadd.f32 1e-05, %v389_v9 }
 0x13f   : > { %764 = vrsqrt.f32 %v390_v11 }
 0x149   : > { %v765_v19 = vpop.eup %764 }
 0x14a   : > { %v392_v21 = vmul.f32 %v765_v19, %v384_v5 }
 0x14c   : > { %v399_v22 = vmul.f32 %v398_v18, %v392_v21 }
 0x14e   : > { %v406_v23 = vadd.f32 %v405_v20, %v399_v22 }
 0x150   : > { %v407_v24 = vpack.c.bf16 %v406_v23, %v406_v23 }
 0x152   : > { %409 = vst.msk [vmem:[#allocation2] sm:$0xf] %vm408_vm1, %v407_v24 }
 0x153 PF: > { %v766_v25 = vld [vmem:[%s895_s16] sm:$0xff]   ;;  %v808_v26 = vmov 0.0   ;;  %v767_v27 = vld [vmem:[%s895_s16 + $0x8] sm:$0xff]   ;;  %vm809_vm2 = vmmov 0   ;;  %vm433_vm3 = vcmask 261120   ;;  %v417_v29 = vlaneseq  ;;  %s810_s16 = smov 120  }
 0x154   : > { %712 = vmatprep.subr.bf16.mxu0 %v808_v26  ;;  %716 = vmatprep.mubr.msk.bf16.mxu0 %vm809_vm2, %v808_v26  ;;  %v415_v31 = vld [vmem:[%s346_s19] sm:$0x1]  ;;  %vm478_vm4 = vcmask 60416   ;;  %s811_s8 = smov 112  }
 0x155   : > { %713 = vmatpush3.bf16.msra.mxu0 %v766_v25  ;;  %v418_v30 = vshrl.u32 %v417_v29, 7  ;;  %v416_v32 = vunpack.c.l.bf16 %v415_v31 }
 0x156   : > { %714 = vmatprep.subr.bf16.mxu0 %v808_v26 }
 0x157   : > { %v419_v33 = vsub.s32 0, %v418_v30 }
 0x159   : > { %715 = vmatpush3.bf16.msra.mxu0 %v767_v27  ;;  %v410_v28 = vld [vmem:[#allocation2] sm:$0xf]  ;;  %v420_v34 = vrot.slane %v416_v32, %v419_v33 }
 0x15c   : > { %717 = vmatmul.mubr.msk.bf16.vlgmr.msra.gmra.mrb[0].mxu0 %vm433_vm3, %v410_v28 }
 0x22f   : > { %v471_v35 = vpop.f32.mrb[0].mxu0 }
 0x230   : > { %v472_v36 = vadd.f32 %v471_v35, %v420_v34  ;;  %v718_v37 = vpop.f32.mrb[1].mxu0 }
 0x231   : > { %v474_v38 = vpop.f32.mrb[2].mxu0 }
 0x232   : > { %v477_v39 = vpack.c.bf16 %v472_v36, %v472_v36  ;;  %v719_v40 = vpop.f32.mrb[3].mxu0 }
 0x234   : > { %483 = vrot.lane.b32.xlu0 %v477_v39, %s810_s16  ;;  %479 = vst.msk [vmem:[%s354_s25] sm:$0xf] %vm478_vm4, %v477_v39 }
 0x238   : > { %487 = vrot.lane.b32.xlu0 %v477_v39, %s811_s8 }
 0x2a6   : > { %v484_v41 = vpop.permute.xlu0 %483 }
 0x2a7   : > { %486 = vst.msk [vmem:[%s362_s14] sm:$0xf] %vm478_vm4, %v484_v41 }
 0x2aa   : > { %v488_v42 = vpop.permute.xlu0 %487 }
 0x2ab   : > { %490 = vst.msk [vmem:[%s370_s0] sm:$0xf] %vm478_vm4, %v488_v42 }
 0x2ac PF: > { %s18_s28 = sadd.s32 1, %s806_s28   ;;  %s970_s24 = smov %s798_s26 }
 0x2ad   : > { %p15_p8 = scmp.ge.s32.totalorder %s18_s28, 10   ;;  %s971_s25 = smov %s802_s27 }
 0x2ae   : > { %s972_s26 = smov %s975_s29  ;;  %s973_s27 = smov %s979_s30 }
 0x2af   :  { %17 = sbr.rel (!%p15_p8) target bundleno = 3 (0x3), region = 104 }

// kernel: transformer_forward.7
= control target key start
LH: loop header
LB: loop body
LE: loop exit
PB: predicated region body
PF: predicated region fallthrough
CT: control target
= control target key end

     0   :  { %s854_s21 = smov 0   ;;  %s856_s22 = smov 0   ;;  %s958_s0 = inlined_call_operand.vmem [shape: bf16[2,4,8,8], index: 0, kind: input, shape index: {}]   ;;  %s959_s1 = inlined_call_operand.vmem [shape: bf16[2,4,8,8], index: 1, kind: input, shape index: {}]   ;;  %s960_s2 = inlined_call_operand.vmem [shape: bf16[2,4,8,8], index: 2, kind: input, shape index: {}]   ;;  %s961_s3 = inlined_call_operand.vmem [shape: bf16[4,8,32], index: 3, kind: input, shape index: {}]   ;;  %s962_s4 = inlined_call_operand.vmem [shape: bf16[1,32], index: 4, kind: input, shape index: {}]   ;;  %s963_s5 = inlined_call_operand.vmem [shape: bf16[2,8,32], index: 5, kind: input, shape index: {}]   ;;  %s964_s6 = inlined_call_operand.vmem [shape: bf16[2,8,32], index: 6, kind: output, shape index: {}]  }
   0x1   :  { %s858_s23 = smov 0   ;;  %s860_s24 = smov 0  }
   0x2   :  { %s862_s25 = smov 0  }
   0x3 LB: > { %s25_s26 = sadd.s32 1, %s807_s23  ;;  %s28_s27 = sadd.s32 1, %s811_s24  ;;  %s815_s25 = sphi %s862_s25, %s16_s25   ;;  %s811_s24 = sphi %s860_s24, %s968_s24   ;;  %s807_s23 = sphi %s858_s23, %s967_s23   ;;  %s803_s22 = sphi %s856_s22, %s966_s22   ;;  %s799_s21 = sphi %s854_s21, %s965_s21  }
   0x4   : > { %p26_p0 = scmp.ge.s32.totalorder %s25_s26, 4  ;;  %p690_p1 = scmp.ge.s32.totalorder %s815_s25, 1 }
   0x5   : > { %p277_p2 = scmp.lt.s32.totalorder %s815_s25, 9 }
   0x6   : > { %s970_s26 = smov (%p26_p0, %s25_s26), 0  ;;  %s972_s27 = smov (!%p26_p0, %s28_s27), %s811_s24 }
   0x7   : > { %p278_p3 = pnand %p690_p1, %p277_p2  ;;  %p30_p4 = scmp.ge.s32.totalorder %s972_s27, 2 }
   0x8   : > { %p333_p5 = scmp.lt.s32.totalorder (!%p278_p3), %s803_s22, 1  ;;  %p335_p6 = scmp.lt.s32.totalorder (!%p278_p3), %s799_s21, 3 }
   0x9   : > { %s974_s27 = smov (%p30_p4, %s972_s27), 0  ;;  %281 = sbr.rel (%p278_p3) target bundleno = 1005 (0x3ed), region = 44 }
   0xa   : > { %p700_p7 = scmp.ne.s32.totalorder (!%p278_p3), %s799_s21, 0 }
  0x10   : > { %s976_s22 = smov (!%p333_p5, %s803_s22), 1  ;;  %v377_v0 = vld [vmem:[%s962_s4] sm:$0x1] (!%p700_p7)  ;;  %v379_v1 = vlaneseq (!%p700_p7)  ;;  %vm384_vm0 = vcmask (!%p700_p7), 261120  }
  0x11   : > { %s336_s28 = scalar_select %p335_p6, %s799_s21, 3 }
  0x12   : > { %s888_s29 = sshll.u32 %s976_s22, 2  ;;  %374 = sbr.rel (%p700_p7) target bundleno = 29 (0x1d), region = 48  ;;  %v378_v3 = vunpack.c.l.bf16 (!%p700_p7), %v377_v0  ;;  %v380_v4 = vshrl.u32 (!%p700_p7), %v379_v1, 7 }
  0x13   : > { %s338_s30 = sadd.s32 %s888_s29, %s336_s28  ;;  %s697_s7 = sshll.u32 %s336_s28, 2 }
  0x14   : > { %s891_s8 = sshll.u32 %s338_s30, 2  ;;  %s896_s11 = scalar_lea.vmem %s961_s3, %s697_s7  ;;  %v381_v6 = vsub.s32 (!%p700_p7), 0, %v380_v4 }
  0x15   : > { %s340_s14 = scalar_lea.vmem %s958_s0, %s891_s8  ;;  %s348_s17 = scalar_lea.vmem %s959_s1, %s891_s8 }
  0x16   : > { %s356_s20 = scalar_lea.vmem %s960_s2, %s891_s8  ;;  %s364_s30 = scalar_lea.vmem %s963_s5, %s888_s29  ;;  %v382_v7 = vrot.slane (!%p700_p7), %v378_v3, %v381_v6 }
  0x17   : > { %s368_s7 = scalar_lea.vmem %s964_s6, %s888_s29  ;;  %v375_v2 = vld [vmem:[%s364_s30] sm:$0xf] (!%p700_p7) }
  0x18   : > { %v376_v5 = vunpack.c.l.bf16 (!%p700_p7), %v375_v2 }
  0x1a   : > { %v383_v8 = vadd.f32 %v382_v7, %v376_v5 }
  0x1c   : > { %385 = vst.msk [vmem:[#allocation2] sm:$0xff] %vm384_vm0, %v383_v8 }
  0x1d PF: > { %v388_v9 = vld [vmem:[%s348_s17] sm:$0xf]  ;;  %vm389_vm1 = vcmask 64512   ;;  %v817_v10 = vmov 0.0   ;;  %vm818_vm2 = vmmov 0   ;;  %vm452_vm3 = vcmask 1043456  }
  0x1e   : > { %713 = vmatprep.subr.bf16.mxu0 %v817_v10  ;;  %v394_v11 = vsel %vm389_vm1, %v388_v9, 0  ;;  %715 = vmatprep.mubr.msk.bf16.mxu0 %vm818_vm2, %v817_v10  ;;  %v386_v12 = vld [vmem:[%s340_s14] sm:$0xf]  ;;  %vm546_vm4 = vcmask 261120   ;;  %p704_p8 = scmp.ne.s32.totalorder %s799_s21, 3 }
  0x1f   : > { %714 = vmatpush3.bf16.xpose.msra.mxu0 %v394_v11  ;;  %719 = vmatprep.subr.bf16.mxu1 %v817_v10  ;;  %v387_v13 = vmul.bf16 1052065461, %v386_v12  ;;  %v448_v24 = vld [vmem:[%s356_s20] sm:$0xf]  ;;  %vm554_vm5 = vcmask (!%p704_p8), 257024  }
  0x20   : > { %721 = vmatprep.mubr.msk.bf16.mxu1 %vm818_vm2, %v817_v10  ;;  %v454_v25 = vsel %vm452_vm3, %v448_v24, 0  ;;  %v498_v28 = vld [vmem:[%s896_s11] sm:$0xf] }
  0x21   : > { %720 = vmatpush3.bf16.msra.mxu1 %v454_v25  ;;  %v503_v30 = vsel %vm452_vm3, %v498_v28, 0 }
  0x22   : > { %725 = vmatprep.subr.bf16.mxu1 %v817_v10 }
  0x23   : > { %v496_v37 = vld [vmem:[#allocation2] sm:$0xff] }
  0x26   : > { %716 = vmatmul.mubr.msk.bf16.vlgmr.msra.gmra.mrb[0].mxu0 %vm389_vm1, %v387_v13 }
  0xf9   : > { %v430_v14 = vpop.f32.mrb[0].mxu0 }
  0xfa   : > { %v717_v15 = vpop.f32.mrb[1].mxu0  ;;  %v436_v16 = vsel %vm389_vm1, %v430_v14, -inf }
  0xfb   : > { %437 = vmax.xlane.f32.xlu0 %v436_v16  ;;  %v433_v17 = vpop.f32.mrb[2].mxu0 }
  0xfc   : > { %v718_v18 = vpop.f32.mrb[3].mxu0 }
 0x188   : > { %v438_v19 = vpop.xlane.xlu0 %437 }
 0x189   : > { %v439_v20 = vsub.f32 %v430_v14, %v438_v19 }
 0x18b   : > { %v440_v21 = vmul.f32 1.442695, %v439_v20 }
 0x18d   : > { %773 = vpow2.f32 %v440_v21 }
 0x197   : > { %v774_v22 = vpop.eup %773 }
 0x198   : > { %v442_v23 = vsel %vm389_vm1, %v774_v22, 0.0 }
 0x199   : > { %443 = vadd.xlane.f32.xlu0 %v442_v23 }
 0x226   : > { %v444_v26 = vpop.xlane.xlu0 %443 }
 0x227   : > { %775 = vrcp.f32 %v444_v26 }
 0x231   : > { %v776_v27 = vpop.eup %775 }
 0x232   : > { %v446_v29 = vmul.f32 %v776_v27, %v774_v22 }
 0x234   : > { %v447_v31 = vpack.c.bf16 %v446_v29, %v446_v29 }
 0x236   : > { %722 = vmatmul.mubr.msk.bf16.vlgmr.msra.gmra.mrb[0].mxu1 %vm389_vm1, %v447_v31 }
 0x237   : > { %726 = vmatpush3.bf16.msra.mxu1 %v503_v30  ;;  %727 = vmatprep.mubr.msk.bf16.mxu1 %vm818_vm2, %v817_v10 }
 0x309   : > { %v490_v32 = vpop.f32.mrb[0].mxu1 }
 0x30a   : > { %v497_v33 = vpack.c.bf16 %v490_v32, %v490_v32  ;;  %v723_v34 = vpop.f32.mrb[1].mxu1 }
 0x30b   : > { %v493_v35 = vpop.f32.mrb[2].mxu1 }
 0x30c   : > { %v724_v36 = vpop.f32.mrb[3].mxu1  ;;  %728 = vmatmul.mubr.msk.bf16.vlgmr.msra.gmra.mrb[4].mxu1 %vm389_vm1, %v497_v33 }
 0x3dc   : > { %551 = sbr.rel (%p704_p8) target bundleno = 1005 (0x3ed), region = 52 }
 0x3df   : > { %v539_v38 = vpop.f32.mrb[4].mxu1 }
 0x3e0   : > { %v545_v39 = vadd.f32 %v539_v38, %v496_v37  ;;  %v729_v40 = vpop.f32.mrb[5].mxu1 }
 0x3e1   : > { %v542_v41 = vpop.f32.mrb[6].mxu1 }
 0x3e2   : > { %547 = vst.msk [vmem:[#allocation2] sm:$0xff] %vm546_vm4, %v545_v39  ;;  %v730_v42 = vpop.f32.mrb[7].mxu1 }
 0x3e9   : > { %v552_v43 = vld [vmem:[#allocation2] sm:$0xff] }
 0x3ea   : > { %v553_v44 = vpack.c.bf16 %v552_v43, %v552_v43 }
 0x3ec   : > { %555 = vst.msk [vmem:[%s368_s7] sm:$0xf] %vm554_vm5, %v553_v44 }
 0x3ed PF: > { %s16_s25 = sadd.s32 1, %s815_s25   ;;  %s965_s21 = smov %s807_s23 }
 0x3ee   : > { %p13_p9 = scmp.ge.s32.totalorder %s16_s25, 10   ;;  %s966_s22 = smov %s811_s24 }
 0x3ef   : > { %s967_s23 = smov %s970_s26  ;;  %s968_s24 = smov %s974_s27 }
 0x3f0   :  { %15 = sbr.rel (!%p13_p9) target bundleno = 3 (0x3), region = 94 }

// kernel: transformer_forward.8
= control target key start
LH: loop header
LB: loop body
LE: loop exit
PB: predicated region body
PF: predicated region fallthrough
CT: control target
= control target key end

     0   :  { %vm35_vm0 = vcmask 261120   ;;  %v402_v16 = vmov 0.0   ;;  %vm403_vm1 = vmmov 0   ;;  %v65_v21 = vlaneseq  ;;  %s535_s0 = inlined_call_operand.vmem [shape: bf16[16,32], index: 0, kind: input, shape index: {}]   ;;  %s536_s3 = inlined_call_operand.vmem [shape: bf16[32,128], index: 3, kind: input, shape index: {}]   ;;  %s537_s1 = inlined_call_operand.vmem [shape: bf16[1,32], index: 1, kind: input, shape index: {}]   ;;  %s538_s2 = inlined_call_operand.vmem [shape: bf16[1,32], index: 2, kind: input, shape index: {}]   ;;  %s539_s5 = inlined_call_operand.vmem [shape: bf16[128,32], index: 5, kind: input, shape index: {}]   ;;  %s540_s4 = inlined_call_operand.vmem [shape: bf16[1,128], index: 4, kind: input, shape index: {}]   ;;  %s541_s6 = inlined_call_operand.vmem [shape: bf16[1,32], index: 6, kind: input, shape index: {}]   ;;  %s542_s7 = inlined_call_operand.vmem [shape: bf16[16,32], index: 7, kind: output, shape index: {}]  }
   0x1   :  { %v331_v0 = vld [vmem:[%s535_s0] sm:$0xff]   ;;  %350 = vmatprep.subr.bf16.mxu0 %v402_v16  ;;  %81 = vst.msk [vmem:[#allocation2] sm:$0xff] %vm35_vm0, %v402_v16  ;;  %82 = vst.msk [vmem:[#allocation2 + $0x8] sm:$0xff] %vm35_vm0, %v402_v16  ;;  %358 = vmatprep.subr.bf16.mxu1 %v402_v16  ;;  %v381_v17 = vld [vmem:[%s536_s3 + $0x8] sm:$0xff]   ;;  %vm306_vm2 = vcmask 257024  }
   0x2   :  { %v447_v1 = vunpack.c.l.bf16 %v331_v0  ;;  %v449_v2 = vunpack.c.h.bf16 %v331_v0  ;;  %v380_v15 = vld [vmem:[%s536_s3] sm:$0xff]   ;;  %354 = vmatprep.mubr.msk.bf16.mxu0 %vm403_vm1, %v402_v16  ;;  %374 = vmatprep.mubr.msk.bf16.mxu1 %vm403_vm1, %v402_v16  ;;  %v66_v25 = vshrl.u32 %v65_v21, 7  ;;  %v383_v44 = vld [vmem:[%s539_s5 + $0x8] sm:$0xff]   ;;  %v384_v45 = vld [vmem:[%s539_s5 + $0x10] sm:$0xff]  }
   0x3   :  { %351 = vmatpush3.bf16.msra.mxu0 %v380_v15  ;;  %v63_v26 = vld [vmem:[%s537_s1] sm:$0x1]  ;;  %v385_v46 = vld [vmem:[%s539_s5 + $0x18] sm:$0xff]   ;;  %v387_v48 = vld [vmem:[%s539_s5 + $0x28] sm:$0xff]  }
   0x4   :  { %v36_v3 = vsel %vm35_vm0, %v447_v1, 0.0  ;;  %v39_v4 = vsel %vm35_vm0, %v449_v2, 0.0  ;;  %352 = vmatprep.subr.bf16.mxu0 %v402_v16  ;;  %v64_v27 = vunpack.c.l.bf16 %v63_v26  ;;  %v477_v28 = vsub.s32 0, %v66_v25  ;;  %v71_v29 = vld [vmem:[%s538_s2] sm:$0x1]  ;;  %v388_v49 = vld [vmem:[%s539_s5 + $0x30] sm:$0xff]  }
   0x5   :  { %37 = vadd.xlane.f32.xlu0 %v36_v3  ;;  %v72_v32 = vunpack.c.l.bf16 %v71_v29  ;;  %v382_v43 = vld [vmem:[%s539_s5] sm:$0xff]   ;;  %v389_v50 = vld [vmem:[%s539_s5 + $0x38] sm:$0xff]  }
   0x6   :  { %v68_v31 = vrot.slane %v64_v27, %v477_v28  ;;  %359 = vmatpush3.bf16.msra.mxu1 %v382_v43  ;;  %v386_v47 = vld [vmem:[%s539_s5 + $0x20] sm:$0xff]  }
   0x7   :  { %353 = vmatpush3.bf16.msra.mxu0 %v381_v17  ;;  %v76_v35 = vrot.slane %v72_v32, %v477_v28  ;;  %360 = vmatprep.subr.bf16.mxu1 %v402_v16  ;;  %v88_v51 = vld [vmem:[%s540_s4] sm:$0x1] }
   0x8   :  { %v89_v52 = vunpack.c.l.bf16 %v88_v51 }
   0x9   :  { %40 = vadd.xlane.f32.xlu0 %v39_v4 }
   0xa   :  { %361 = vmatpush3.bf16.msra.mxu1 %v383_v44  ;;  %v93_v53 = vrot.slane %v89_v52, %v477_v28 }
   0xb   :  { %362 = vmatprep.subr.bf16.mxu1 %v402_v16 }
   0xe   :  { %363 = vmatpush3.bf16.msra.mxu1 %v384_v45 }
   0xf   :  { %364 = vmatprep.subr.bf16.mxu1 %v402_v16 }
  0x12   :  { %365 = vmatpush3.bf16.msra.mxu1 %v385_v46 }
  0x13   :  { %366 = vmatprep.subr.bf16.mxu1 %v402_v16 }
  0x16   :  { %367 = vmatpush3.bf16.msra.mxu1 %v386_v47 }
  0x17   :  { %368 = vmatprep.subr.bf16.mxu1 %v402_v16 }
  0x1a   :  { %369 = vmatpush3.bf16.msra.mxu1 %v387_v48 }
  0x1b   :  { %370 = vmatprep.subr.bf16.mxu1 %v402_v16 }
  0x1e   :  { %371 = vmatpush3.bf16.msra.mxu1 %v388_v49 }
  0x1f   :  { %372 = vmatprep.subr.bf16.mxu1 %v402_v16 }
  0x22   :  { %373 = vmatpush3.bf16.msra.mxu1 %v389_v50 }
  0x92   :  { %v38_v5 = vpop.xlane.xlu0 %37 }
  0x93   :  { %v43_v6 = vmul.f32 0.03125, %v38_v5 }
  0x95   :  { %v45_v7 = vsub.f32 %v447_v1, %v43_v6 }
  0x96   :  { %v41_v8 = vpop.xlane.xlu0 %40 }
  0x97   :  { %v44_v9 = vmul.f32 0.03125, %v41_v8  ;;  %v47_v10 = vmul.f32 %v45_v7, %v45_v7 }
  0x99   :  { %v46_v11 = vsub.f32 %v449_v2, %v44_v9  ;;  %v49_v12 = vsel %vm35_vm0, %v47_v10, 0.0 }
  0x9a   :  { %50 = vadd.xlane.f32.xlu1 %v49_v12  ;;  %v284_v12 = vld [vmem:[%s541_s6] sm:$0x1] }
  0x9b   :  { %v48_v13 = vmul.f32 %v46_v11, %v46_v11 }
  0x9d   :  { %v52_v14 = vsel %vm35_vm0, %v48_v13, 0.0 }
  0x9e   :  { %53 = vadd.xlane.f32.xlu1 %v52_v14  ;;  %v168_v14 = vld [vmem:[#allocation2 + $0x8] sm:$0xff] }
 0x127   :  { %v51_v18 = vpop.xlane.xlu1 %50 }
 0x128   :  { %v55_v19 = vmul.f32 0.03125, %v51_v18  ;;  %v285_v18 = vunpack.c.l.bf16 %v284_v12 }
 0x12a   :  { %v57_v20 = vadd.f32 1e-05, %v55_v19  ;;  %v289_v21 = vrot.slane %v285_v18, %v477_v28 }
 0x12b   :  { %v54_v22 = vpop.xlane.xlu1 %53 }
 0x12c   :  { %390 = vrsqrt.f32 %v57_v20  ;;  %v56_v23 = vmul.f32 0.03125, %v54_v22 }
 0x12e   :  { %v58_v24 = vadd.f32 1e-05, %v56_v23 }
 0x130   :  { %392 = vrsqrt.f32 %v58_v24 }
 0x136   :  { %v391_v30 = vpop.eup %390 }
 0x137   :  { %v61_v33 = vmul.f32 %v391_v30, %v45_v7 }
 0x139   :  { %v69_v36 = vmul.f32 %v68_v31, %v61_v33 }
 0x13a   :  { %v393_v34 = vpop.eup %392 }
 0x13b   :  { %v62_v37 = vmul.f32 %v393_v34, %v46_v11  ;;  %v77_v39 = vadd.f32 %v76_v35, %v69_v36  ;;  %v167_v11 = vld [vmem:[#allocation2] sm:$0xff] }
 0x13d   :  { %v70_v38 = vmul.f32 %v68_v31, %v62_v37 }
 0x13f   :  { %v78_v40 = vadd.f32 %v76_v35, %v70_v38 }
 0x141   :  { %v79_v41 = vpack.c.bf16 %v78_v40, %v77_v39 }
 0x143   :  { %80 = vst.msk [vmem:[#allocation3] sm:$0xff] %vm35_vm0, %v79_v41 }
 0x14a   :  { %v83_v42 = vld [vmem:[#allocation3] sm:$0xff] }
 0x14b   :  { %355 = vmatmul.mubr.msk.bf16.vlgmr.msra.gmra.mrb[0].mxu0 %vm35_vm0, %v83_v42 }
 0x21e   :  { %v144_v54 = vpop.f32.mrb[0].mxu0 }
 0x21f   :  { %v145_v55 = vadd.f32 %v144_v54, %v93_v53  ;;  %v356_v56 = vpop.f32.mrb[1].mxu0 }
 0x220   :  { %v147_v57 = vpop.f32.mrb[2].mxu0 }
 0x221   :  { %v316_v58 = vmul.f32 -1.702, %v145_v55  ;;  %v148_v59 = vadd.f32 %v147_v57, %v93_v53  ;;  %v357_v60 = vpop.f32.mrb[3].mxu0 }
 0x223   :  { %v155_v61 = vmul.f32 1.442695, %v316_v58  ;;  %v317_v62 = vmul.f32 -1.702, %v148_v59 }
 0x225   :  { %394 = vpow2.f32 %v155_v61  ;;  %v157_v63 = vmul.f32 1.442695, %v317_v62 }
 0x227   :  { %396 = vpow2.f32 %v157_v63 }
 0x22f   :  { %v395_v0 = vpop.eup %394 }
 0x230   :  { %v159_v3 = vadd.f32 1.0, %v395_v0 }
 0x231   :  { %v397_v4 = vpop.eup %396 }
 0x232   :  { %398 = vrcp.f32 %v159_v3  ;;  %v160_v5 = vadd.f32 1.0, %v397_v4 }
 0x234   :  { %400 = vrcp.f32 %v160_v5 }
 0x23c   :  { %v399_v6 = vpop.eup %398 }
 0x23d   :  { %v165_v8 = vmul.f32 %v399_v6, %v145_v55 }
 0x23e   :  { %v401_v7 = vpop.eup %400 }
 0x23f   :  { %v166_v9 = vmul.f32 %v401_v7, %v148_v59 }
 0x241   :  { %v169_v10 = vpack.c.bf16 %v166_v9, %v165_v8 }
 0x243   :  { %375 = vmatmul.mubr.bf16.vlgmr.msra.gmra.mrb[0].mxu1 %v169_v10 }
 0x316   :  { %v268_v13 = vpop.f32.mrb[0].mxu1 }
 0x317   :  { %v275_v15 = vadd.f32 %v268_v13, %v167_v11  ;;  %v376_v16 = vpop.f32.mrb[1].mxu1 }
 0x318   :  { %v271_v17 = vpop.f32.mrb[2].mxu1 }
 0x319   :  { %277 = vst.msk [vmem:[#allocation2] sm:$0xff] %vm35_vm0, %v275_v15  ;;  %v276_v19 = vadd.f32 %v271_v17, %v168_v14  ;;  %v377_v20 = vpop.f32.mrb[3].mxu1 }
 0x31b   :  { %278 = vst.msk [vmem:[#allocation2 + $0x8] sm:$0xff] %vm35_vm0, %v276_v19 }
 0x320   :  { %v282_v22 = vld [vmem:[#allocation2] sm:$0xff] }
 0x321   :  { %v290_v23 = vadd.f32 %v289_v21, %v282_v22 }
 0x322   :  { %v283_v24 = vld [vmem:[#allocation2 + $0x8] sm:$0xff] }
 0x323   :  { %v296_v25 = vadd.f32 %v447_v1, %v290_v23  ;;  %v291_v26 = vadd.f32 %v289_v21, %v283_v24 }
 0x325   :  { %v328_v27 = vpack.c.bf16 %v296_v25, %v296_v25  ;;  %v297_v29 = vadd.f32 %v449_v2, %v291_v26 }
 0x327   :  { %307 = vst.msk [vmem:[%s542_s7] sm:$0xf] %vm306_vm2, %v328_v27  ;;  %v329_v30 = vpack.c.bf16 %v297_v29, %v297_v29 }
 0x329   :  { %308 = vst.msk [vmem:[%s542_s7 + $0x4] sm:$0xf] %vm306_vm2, %v329_v30 }

</bundles_post_ra>
